<compile_context>
chip_gen: v5e
topology: v5e:2x2
jax: 0.10.0
libtpu: 0.0.40
codegen_flags: <defaults>
</compile_context>

<pallas_src>
import jax
import jax.numpy as jnp
from jax import lax
from jax.experimental import pallas as pl
from jax.experimental.pallas import tpu as pltpu

SMOOTH = 1e-06
THRESHOLD = 0.5
_LANE = 128


def _make_iou_kernel(total_rows, steps_per_split, s_block, threshold):
    def kernel(in_ref, tg_ref, inter_ref, pin_ref, ptg_ref):
        s = pl.program_id(0)   # parallel split (megacore sharding on v7x)
        k = pl.program_id(1)   # reduction step within this split

        @pl.when(k == 0)
        def _():
            inter_ref[...] = jnp.zeros_like(inter_ref)
            pin_ref[...] = jnp.zeros_like(pin_ref)
            ptg_ref[...] = jnp.zeros_like(ptg_ref)

        # Row offset of this tile in the *unclamped* schedule.  The index_map
        # clamps the DMA so it never reads past the array; any rows of this
        # tile that fall past `total_rows` are zeroed by the mask below.
        row0 = (s * steps_per_split + k) * s_block
        rows = lax.broadcasted_iota(jnp.int32, in_ref.shape, 1) + row0
        valid = rows < total_rows

        x = in_ref[...]                       # native dtype: only compared
        t = tg_ref[...].astype(jnp.float32)   # cast in-kernel (cheap VPU op)

        hit = jnp.logical_and(valid, x > threshold)
        pred = jnp.where(hit, 1.0, 0.0)       # (inputs > threshold).float()
        tgt = jnp.where(valid, t, 0.0)        # masked targets
        inter = jnp.where(hit, tgt, 0.0)      # binarized * targets (no mul)

        # Per-lane partial sums: reduce only the row axis per step.  The
        # cross-lane reduction happens exactly once, outside the kernel.
        inter_ref[0] += jnp.sum(inter, axis=1)
        pin_ref[0] += jnp.sum(pred, axis=1)
        ptg_ref[0] += jnp.sum(tgt, axis=1)

    return kernel


def iou_metric(inputs, targets, *, smooth=SMOOTH, threshold=THRESHOLD,
               n_splits=2, target_block_bytes=2 * 1024 * 1024):
    """inputs, targets: [B, C, D, H, W] arrays.  Returns scalar mean IOU."""
    B = inputs.shape[0]
    x = inputs.reshape(B, -1)
    t = targets.reshape(B, -1)
    N = x.shape[1]

    # Only pad when N isn't a multiple of 128 (never for typical volumes, and
    # never for the test shape).  Inputs are padded with the dtype minimum so
    # correctness does not depend on threshold > 0; target pads are zeros.
    pad = (-N) % _LANE
    if pad:
        neg = (jnp.finfo(x.dtype).min if jnp.issubdtype(x.dtype, jnp.floating)
               else jnp.iinfo(x.dtype).min)
        x = jnp.pad(x, ((0, 0), (0, pad)), constant_values=neg)
        t = jnp.pad(t, ((0, 0), (0, pad)))

    R = x.shape[1] // _LANE
    x3 = x.reshape(B, R, _LANE)   # layout no-op: lanes stay the minor dim
    t3 = t.reshape(B, R, _LANE)

    # Largest row tile that keeps ~2 MiB per input block: double-buffered,
    # 2 inputs => ~8 MiB of VMEM, safe under v5e(16 MiB)/v6e(32)/v7x(32)
    # default scoped-VMEM limits while sitting on the HBM roofline plateau.
    itemsize = max(x3.dtype.itemsize, t3.dtype.itemsize)
    rows_budget = max(8, target_block_bytes // (B * _LANE * itemsize))
    if R <= rows_budget:
        s_block = R                       # one step covers everything
    else:
        s_block = max(8, (rows_budget // 8) * 8)

    total_steps = pl.cdiv(R, s_block)
    n_splits = max(1, min(n_splits, total_steps))
    steps_per_split = pl.cdiv(total_steps, n_splits)

    def in_map(s, k):
        # Clamp so tiles scheduled past the end just re-read the last valid
        # tile; the kernel masks them out via the unclamped row index.
        return (0, jnp.minimum(s * steps_per_split + k, total_steps - 1), 0)

    def out_map(s, k):
        return (s, 0, 0)

    part_shape = jax.ShapeDtypeStruct((n_splits, B, _LANE), jnp.float32)
    kernel = _make_iou_kernel(R, steps_per_split, s_block, threshold)

    inter_p, pin_p, ptg_p = pl.pallas_call(
        kernel,
        out_shape=(part_shape, part_shape, part_shape),
        grid_spec=pltpu.PrefetchScalarGridSpec(
            num_scalar_prefetch=0,
            grid=(n_splits, steps_per_split),
            in_specs=[
                pl.BlockSpec((B, s_block, _LANE), in_map),
                pl.BlockSpec((B, s_block, _LANE), in_map),
            ],
            out_specs=[
                pl.BlockSpec((1, B, _LANE), out_map),
                pl.BlockSpec((1, B, _LANE), out_map),
                pl.BlockSpec((1, B, _LANE), out_map),
            ],
        ),
        compiler_params=pltpu.CompilerParams(
            dimension_semantics=("parallel", "arbitrary"),
        ),
    )(x3, t3)

    # Tiny epilogue: combine per-split / per-lane partials, compute IOU.
    intersection = inter_p.sum(axis=(0, 2))                       # (B,)
    union = pin_p.sum(axis=(0, 2)) + ptg_p.sum(axis=(0, 2)) - intersection
    iou = (intersection + smooth) / (union + smooth)
    return iou.mean()


def _reference_iou(inputs, targets, smooth=SMOOTH, threshold=THRESHOLD):
    B = inputs.shape[0]
    x = (inputs.reshape(B, -1) > threshold).astype(jnp.float32)
    t = targets.reshape(B, -1).astype(jnp.float32)
    inter = jnp.sum(x * t, axis=1)
    union = jnp.sum(x, axis=1) + jnp.sum(t, axis=1) - inter
    return jnp.mean((inter + smooth) / (union + smooth))


if __name__ == "__main__":
    key = jax.random.PRNGKey(0)
    k1, k2 = jax.random.split(key)
    # [batch, C, D, H, W] = [2, 4, 4, 8, 8]  ->  N = 1024 per sample
    B, C, D, H, W = 2, 4, 4, 8, 8
    inputs = jax.random.uniform(k1, (B, C, D, H, W), dtype=jnp.float32)
    targets = (jax.random.uniform(k2, (B, C, D, H, W)) > 0.5).astype(jnp.float32)

    result = iou_metric(inputs, targets)
    jax.block_until_ready(result)

    ref = _reference_iou(inputs, targets)
    assert jnp.allclose(result, ref, atol=1e-5, rtol=1e-5), (result, ref)
    print("KERNEL_OK")
</pallas_src>

<mosaic_0001>
module attributes {stable_mosaic.version = 11 : i64} {
  func.func @kernel(%arg0: i32, %arg1: i32, %arg2: memref<2x8x128xf32, #tpu.memory_space<vmem>>, %arg3: memref<2x8x128xf32, #tpu.memory_space<vmem>>, %arg4: memref<1x2x128xf32, #tpu.memory_space<vmem>>, %arg5: memref<1x2x128xf32, #tpu.memory_space<vmem>>, %arg6: memref<1x2x128xf32, #tpu.memory_space<vmem>>) attributes {dimension_semantics = [#tpu.dimension_semantics<parallel>, #tpu.dimension_semantics<arbitrary>], iteration_bounds = array<i64: 1, 1>, scalar_prefetch = 0 : i64, scratch_operands = 0 : i64, tpu.core_type = #tpu.core_type<tc>, window_params = [{transform_indices = @transform_0, window_bounds = array<i64: 2, 8, 128>}, {transform_indices = @transform_1, window_bounds = array<i64: 2, 8, 128>}, {transform_indices = @transform_2, window_bounds = array<i64: 1, 2, 128>}, {transform_indices = @transform_3, window_bounds = array<i64: 1, 2, 128>}, {transform_indices = @transform_4, window_bounds = array<i64: 1, 2, 128>}]} {
    %c0_i32 = arith.constant 0 : i32
    %0 = arith.cmpi eq, %arg1, %c0_i32 : i32
    %1 = arith.extui %0 : i1 to i32
    %c0_i32_0 = arith.constant 0 : i32
    %2 = arith.cmpi ne, %1, %c0_i32_0 : i32
    scf.if %2 {
      %cst_32 = arith.constant 0.000000e+00 : f32
      %44 = vector.broadcast %cst_32 : f32 to vector<1x2x128xf32>
      %c0_33 = arith.constant 0 : index
      %c0_34 = arith.constant 0 : index
      %c0_35 = arith.constant 0 : index
      %45 = vector.load %arg4[%c0_33, %c0_34, %c0_35] : memref<1x2x128xf32, #tpu.memory_space<vmem>>, vector<1x2x128xf32>
      tpu.vector_store %arg4[%c0_33, %c0_34, %c0_35], %44 {strides = array<i32>} : memref<1x2x128xf32, #tpu.memory_space<vmem>>, vector<1x2x128xf32>,
      %cst_36 = arith.constant 0.000000e+00 : f32
      %46 = vector.broadcast %cst_36 : f32 to vector<1x2x128xf32>
      %c0_37 = arith.constant 0 : index
      %c0_38 = arith.constant 0 : index
      %c0_39 = arith.constant 0 : index
      %47 = vector.load %arg5[%c0_37, %c0_38, %c0_39] : memref<1x2x128xf32, #tpu.memory_space<vmem>>, vector<1x2x128xf32>
      tpu.vector_store %arg5[%c0_37, %c0_38, %c0_39], %46 {strides = array<i32>} : memref<1x2x128xf32, #tpu.memory_space<vmem>>, vector<1x2x128xf32>,
      %cst_40 = arith.constant 0.000000e+00 : f32
      %48 = vector.broadcast %cst_40 : f32 to vector<1x2x128xf32>
      %c0_41 = arith.constant 0 : index
      %c0_42 = arith.constant 0 : index
      %c0_43 = arith.constant 0 : index
      %49 = vector.load %arg6[%c0_41, %c0_42, %c0_43] : memref<1x2x128xf32, #tpu.memory_space<vmem>>, vector<1x2x128xf32>
      tpu.vector_store %arg6[%c0_41, %c0_42, %c0_43], %48 {strides = array<i32>} : memref<1x2x128xf32, #tpu.memory_space<vmem>>, vector<1x2x128xf32>,
    } else {
    }
    %c1_i32 = arith.constant 1 : i32
    %3 = arith.muli %arg0, %c1_i32 : i32
    %4 = arith.addi %3, %arg1 : i32
    %c8_i32 = arith.constant 8 : i32
    %5 = arith.muli %4, %c8_i32 : i32
    %6 = tpu.iota {dimensions = array<i32: 1>} : vector<2x8x128xi32>
    %7 = vector.broadcast %5 : i32 to vector<2x8x128xi32>
    %8 = arith.addi %6, %7 : vector<2x8x128xi32>
    %c8_i32_1 = arith.constant 8 : i32
    %9 = vector.broadcast %c8_i32_1 : i32 to vector<2x8x128xi32>
    %10 = arith.cmpi slt, %8, %9 : vector<2x8x128xi32>
    %c0 = arith.constant 0 : index
    %c0_2 = arith.constant 0 : index
    %c0_3 = arith.constant 0 : index
    %11 = vector.load %arg2[%c0, %c0_2, %c0_3] : memref<2x8x128xf32, #tpu.memory_space<vmem>>, vector<2x8x128xf32>
    %c0_4 = arith.constant 0 : index
    %c0_5 = arith.constant 0 : index
    %c0_6 = arith.constant 0 : index
    %12 = vector.load %arg3[%c0_4, %c0_5, %c0_6] : memref<2x8x128xf32, #tpu.memory_space<vmem>>, vector<2x8x128xf32>
    %cst = arith.constant 5.000000e-01 : f32
    %13 = vector.broadcast %cst : f32 to vector<2x8x128xf32>
    %14 = arith.cmpf ogt, %11, %13 : vector<2x8x128xf32>
    %15 = arith.andi %10, %14 : vector<2x8x128xi1>
    %cst_7 = arith.constant 1.000000e+00 : f32
    %cst_8 = arith.constant 0.000000e+00 : f32
    %16 = vector.broadcast %cst_7 : f32 to vector<2x8x128xf32>
    %17 = vector.broadcast %cst_8 : f32 to vector<2x8x128xf32>
    %18 = arith.select %15, %16, %17 : vector<2x8x128xi1>, vector<2x8x128xf32>
    %cst_9 = arith.constant 0.000000e+00 : f32
    %19 = vector.broadcast %cst_9 : f32 to vector<2x8x128xf32>
    %20 = arith.select %10, %12, %19 : vector<2x8x128xi1>, vector<2x8x128xf32>
    %cst_10 = arith.constant 0.000000e+00 : f32
    %21 = vector.broadcast %cst_10 : f32 to vector<2x8x128xf32>
    %22 = arith.select %15, %20, %21 : vector<2x8x128xi1>, vector<2x8x128xf32>
    %c0_11 = arith.constant 0 : index
    %c0_12 = arith.constant 0 : index
    %c0_13 = arith.constant 0 : index
    %23 = vector.load %arg4[%c0_11, %c0_12, %c0_13] : memref<1x2x128xf32, #tpu.memory_space<vmem>>, vector<1x2x128xf32>
    %24 = vector.shape_cast %23 : vector<1x2x128xf32> to vector<2x128xf32>
    %cst_14 = arith.constant dense<0.000000e+00> : vector<2x128xf32>
    %25 = vector.multi_reduction <add>, %22, %cst_14 [1] : vector<2x8x128xf32> to vector<2x128xf32>
    %26 = arith.addf %24, %25 : vector<2x128xf32>
    %c0_15 = arith.constant 0 : index
    %c0_16 = arith.constant 0 : index
    %c0_17 = arith.constant 0 : index
    %27 = vector.load %arg4[%c0_15, %c0_16, %c0_17] : memref<1x2x128xf32, #tpu.memory_space<vmem>>, vector<1x2x128xf32>
    %28 = vector.shape_cast %27 : vector<1x2x128xf32> to vector<2x128xf32>
    %29 = vector.shape_cast %26 : vector<2x128xf32> to vector<1x2x128xf32>
    tpu.vector_store %arg4[%c0_15, %c0_16, %c0_17], %29 {strides = array<i32>} : memref<1x2x128xf32, #tpu.memory_space<vmem>>, vector<1x2x128xf32>,
    %c0_18 = arith.constant 0 : index
    %c0_19 = arith.constant 0 : index
    %c0_20 = arith.constant 0 : index
    %30 = vector.load %arg5[%c0_18, %c0_19, %c0_20] : memref<1x2x128xf32, #tpu.memory_space<vmem>>, vector<1x2x128xf32>
    %31 = vector.shape_cast %30 : vector<1x2x128xf32> to vector<2x128xf32>
    %cst_21 = arith.constant dense<0.000000e+00> : vector<2x128xf32>
    %32 = vector.multi_reduction <add>, %18, %cst_21 [1] : vector<2x8x128xf32> to vector<2x128xf32>
    %33 = arith.addf %31, %32 : vector<2x128xf32>
    %c0_22 = arith.constant 0 : index
    %c0_23 = arith.constant 0 : index
    %c0_24 = arith.constant 0 : index
    %34 = vector.load %arg5[%c0_22, %c0_23, %c0_24] : memref<1x2x128xf32, #tpu.memory_space<vmem>>, vector<1x2x128xf32>
    %35 = vector.shape_cast %34 : vector<1x2x128xf32> to vector<2x128xf32>
    %36 = vector.shape_cast %33 : vector<2x128xf32> to vector<1x2x128xf32>
    tpu.vector_store %arg5[%c0_22, %c0_23, %c0_24], %36 {strides = array<i32>} : memref<1x2x128xf32, #tpu.memory_space<vmem>>, vector<1x2x128xf32>,
    %c0_25 = arith.constant 0 : index
    %c0_26 = arith.constant 0 : index
    %c0_27 = arith.constant 0 : index
    %37 = vector.load %arg6[%c0_25, %c0_26, %c0_27] : memref<1x2x128xf32, #tpu.memory_space<vmem>>, vector<1x2x128xf32>
    %38 = vector.shape_cast %37 : vector<1x2x128xf32> to vector<2x128xf32>
    %cst_28 = arith.constant dense<0.000000e+00> : vector<2x128xf32>
    %39 = vector.multi_reduction <add>, %20, %cst_28 [1] : vector<2x8x128xf32> to vector<2x128xf32>
    %40 = arith.addf %38, %39 : vector<2x128xf32>
    %c0_29 = arith.constant 0 : index
    %c0_30 = arith.constant 0 : index
    %c0_31 = arith.constant 0 : index
    %41 = vector.load %arg6[%c0_29, %c0_30, %c0_31] : memref<1x2x128xf32, #tpu.memory_space<vmem>>, vector<1x2x128xf32>
    %42 = vector.shape_cast %41 : vector<1x2x128xf32> to vector<2x128xf32>
    %43 = vector.shape_cast %40 : vector<2x128xf32> to vector<1x2x128xf32>
    tpu.vector_store %arg6[%c0_29, %c0_30, %c0_31], %43 {strides = array<i32>} : memref<1x2x128xf32, #tpu.memory_space<vmem>>, vector<1x2x128xf32>,
    return
  }
  func.func @transform_0(%arg0: i32, %arg1: i32) -> (i32, i32, i32) {
    %c1_i32 = arith.constant 1 : i32
    %0 = arith.muli %arg0, %c1_i32 : i32
    %1 = arith.addi %0, %arg1 : i32
    %c0_i32 = arith.constant 0 : i32
    %2 = arith.minsi %1, %c0_i32 : i32
    %c0_i32_0 = arith.constant 0 : i32
    %c0_i32_1 = arith.constant 0 : i32
    %c0_i32_2 = arith.constant 0 : i32
    return %c0_i32_0, %2, %c0_i32_1 : i32, i32, i32
  }
  func.func @transform_1(%arg0: i32, %arg1: i32) -> (i32, i32, i32) {
    %c1_i32 = arith.constant 1 : i32
    %0 = arith.muli %arg0, %c1_i32 : i32
    %1 = arith.addi %0, %arg1 : i32
    %c0_i32 = arith.constant 0 : i32
    %2 = arith.minsi %1, %c0_i32 : i32
    %c0_i32_0 = arith.constant 0 : i32
    %c0_i32_1 = arith.constant 0 : i32
    %c0_i32_2 = arith.constant 0 : i32
    return %c0_i32_0, %2, %c0_i32_1 : i32, i32, i32
  }
  func.func @transform_2(%arg0: i32, %arg1: i32) -> (i32, i32, i32) {
    %c0_i32 = arith.constant 0 : i32
    %c0_i32_0 = arith.constant 0 : i32
    %c0_i32_1 = arith.constant 0 : i32
    return %arg0, %c0_i32, %c0_i32_0 : i32, i32, i32
  }
  func.func @transform_3(%arg0: i32, %arg1: i32) -> (i32, i32, i32) {
    %c0_i32 = arith.constant 0 : i32
    %c0_i32_0 = arith.constant 0 : i32
    %c0_i32_1 = arith.constant 0 : i32
    return %arg0, %c0_i32, %c0_i32_0 : i32, i32, i32
  }
  func.func @transform_4(%arg0: i32, %arg1: i32) -> (i32, i32, i32) {
    %c0_i32 = arith.constant 0 : i32
    %c0_i32_0 = arith.constant 0 : i32
    %c0_i32_1 = arith.constant 0 : i32
    return %arg0, %c0_i32, %c0_i32_0 : i32, i32, i32
  }
}

</mosaic_0001>

<bundles_post_ra>
// kernel: tpu_custom_call.1
= control target key start
LH: loop header
LB: loop body
LE: loop exit
PB: predicated region body
PF: predicated region fallthrough
CT: control target
= control target key end

     0   :  { %10 = vsyncpa [#allocation3], 0  ;;  %s390_s0 = inlined_call_operand.hbm [shape: f32[2,8,128], index: 0, kind: input, shape index: {}]   ;;  %s391_s1 = inlined_call_operand.hbm [shape: f32[2,8,128], index: 1, kind: input, shape index: {}]   ;;  %s392_s2 = inlined_call_operand.hbm [shape: f32[1,2,128], index: 2, kind: output, shape index: {0}]   ;;  %s393_s3 = inlined_call_operand.hbm [shape: f32[1,2,128], index: 3, kind: output, shape index: {1}]   ;;  %s394_s4 = inlined_call_operand.hbm [shape: f32[1,2,128], index: 4, kind: output, shape index: {2}]  }
   0x1   :  { %11 = vsyncpa [#allocation6], 0 }
   0x2   :  { %12 = vsyncpa [#allocation4], 0 }
   0x3   :  { %13 = vsyncpa [#allocation9], 0  ;;  %s23_s17 = sshll.u32 %s390_s0, 4  ;;  %s339_s18 = smov [#allocation2]   ;;  %s24_s17 = int_to_ptr.hbm [resolvable:$true] %s23_s17 }
   0x4   :  { %s25_s19 = sshll.u32 %s339_s18, 4  ;;  %s41_s22 = sshll.u32 %s391_s1, 4  ;;  %s26_s19 = int_to_ptr.vmem [resolvable:$true] %s25_s19  ;;  %s42_s22 = int_to_ptr.hbm [resolvable:$true] %s41_s22 }
   0x5   :  { %s340_s23 = smov 128   ;;  %s341_s24 = smov 8  }
   0x6   :  { %31 = dma.hbm_to_vmem [thread:$0]  %s24_s17, 256, %s26_s19, [#allocation3], %s340_s23, %s340_s23, %s341_s24  }
   0x7   :  { %s342_s25 = smov [#allocation5]  }
   0x8   :  { %s43_s26 = sshll.u32 %s342_s25, 4  ;;  %s44_s26 = int_to_ptr.vmem [resolvable:$true] %s43_s26 }
   0x9   :  { %49 = dma.hbm_to_vmem [thread:$0]  %s42_s22, 256, %s44_s26, [#allocation6], %s340_s23, %s340_s23, %s341_s24  }
   0xa   :  { %331 = dma.done.wait [#allocation3], 256  }
   0xb   :  { %332 = vsyncadd [#allocation3], 4294967040 }
   0xc   :  { %333 = dma.done.wait [#allocation6], 256  }
   0xd   :  { %334 = vsyncadd [#allocation6], 4294967040  ;;  %v343_v0 = vmov 0.0   ;;  %v78_v1 = vld [vmem:[#allocation2] sm:$0xff]  ;;  %v79_v2 = vld [vmem:[#allocation2 + $0x8] sm:$0xff]  ;;  %vm107_vm2 = vcmask 1041409  }
   0xe   :  { %69 = vst [vmem:[#allocation8] sm:$0x3] %v343_v0  ;;  %v80_v3 = vld [vmem:[#allocation5] sm:$0xff]  ;;  %v81_v4 = vld [vmem:[#allocation5 + $0x8] sm:$0xff]  ;;  %vm82_vm0 = vcmp.gt.f32.partialorder %v78_v1, 0.5  ;;  %vm83_vm1 = vcmp.gt.f32.partialorder %v79_v2, 0.5 }
   0xf   :  { %68 = vst [vmem:[#allocation7] sm:$0x3] %v343_v0  ;;  %v132_v5 = vrot.slane %v80_v3, 4  ;;  %v86_v6 = vsel %vm82_vm0, 1.0, %v343_v0  ;;  %v87_v7 = vsel %vm83_vm1, 1.0, %v343_v0  ;;  %v90_v8 = vsel %vm82_vm0, %v80_v3, 0.0 }
  0x10   :  { %70 = vst [vmem:[#allocation10] sm:$0x3] %v343_v0  ;;  %v91_v9 = vsel %vm83_vm1, %v81_v4, 0.0  ;;  %v93_v10 = vrot.slane %v90_v8, 4  ;;  %v113_v12 = vrot.slane %v86_v6, 4  ;;  %v119_v13 = vrot.slane %v87_v7, 4 }
  0x11   :  { %v99_v11 = vrot.slane %v91_v9, 4  ;;  %v133_v14 = vadd.f32 %v132_v5, %v80_v3  ;;  %v138_v15 = vrot.slane %v81_v4, 4  ;;  %s344_s0 = smov [#allocation8]   ;;  %s168_s29 = sshll.u32 %s393_s3, 4  ;;  %s169_s29 = int_to_ptr.hbm [resolvable:$true] %s168_s29 }
  0x12   :  { %v114_v16 = vadd.f32 %v113_v12, %v86_v6  ;;  %v120_v17 = vadd.f32 %v119_v13, %v87_v7  ;;  %v94_v18 = vadd.f32 %v93_v10, %v90_v8  ;;  %s166_s1 = sshll.u32 %s344_s0, 4  ;;  %s345_s30 = smov [#allocation7]   ;;  %s167_s1 = int_to_ptr.vmem [resolvable:$true] %s166_s1 }
  0x13   :  { %v100_v19 = vadd.f32 %v99_v11, %v91_v9  ;;  %v134_v20 = vrot.slane %v133_v14, 2  ;;  %v139_v21 = vadd.f32 %v138_v15, %v81_v4  ;;  %s155_s5 = sshll.u32 %s345_s30, 4  ;;  %s157_s8 = sshll.u32 %s392_s2, 4  ;;  %s156_s5 = int_to_ptr.vmem [resolvable:$true] %s155_s5  ;;  %s158_s8 = int_to_ptr.hbm [resolvable:$true] %s157_s8 }
  0x14   :  { %v115_v22 = vrot.slane %v114_v16, 2  ;;  %v121_v23 = vrot.slane %v120_v17, 2  ;;  %v95_v24 = vrot.slane %v94_v18, 2  ;;  %s346_s9 = smov [#allocation10]   ;;  %s179_s13 = sshll.u32 %s394_s4, 4  ;;  %s180_s13 = int_to_ptr.hbm [resolvable:$true] %s179_s13 }
  0x15   :  { %v101_v25 = vrot.slane %v100_v19, 2  ;;  %v135_v26 = vadd.f32 %v134_v20, %v133_v14  ;;  %v140_v27 = vrot.slane %v139_v21, 2  ;;  %v112_v40 = vld [vmem:[#allocation8] sm:$0x3]  ;;  %s177_s10 = sshll.u32 %s346_s9, 4  ;;  %s178_s10 = int_to_ptr.vmem [resolvable:$true] %s177_s10 }
  0x16   :  { %v116_v28 = vadd.f32 %v115_v22, %v114_v16  ;;  %v122_v29 = vadd.f32 %v121_v23, %v120_v17  ;;  %v96_v30 = vadd.f32 %v95_v24, %v94_v18  ;;  %v92_v43 = vld [vmem:[#allocation7] sm:$0x3] }
  0x17   :  { %v102_v31 = vadd.f32 %v101_v25, %v100_v19  ;;  %v136_v32 = vrot.slane %v135_v26, 1  ;;  %v141_v33 = vadd.f32 %v140_v27, %v139_v21  ;;  %v131_v46 = vld [vmem:[#allocation10] sm:$0x3] }
  0x18   :  { %v117_v34 = vrot.slane %v116_v28, 1  ;;  %v123_v35 = vrot.slane %v122_v29, 1  ;;  %v97_v36 = vrot.slane %v96_v30, 1 }
  0x19   :  { %v103_v37 = vrot.slane %v102_v31, 1  ;;  %v137_v38 = vadd.f32 %v136_v32, %v135_v26  ;;  %v142_v39 = vrot.slane %v141_v33, 1 }
  0x1a   :  { %v118_v41 = vadd.f32 %v117_v34, %v116_v28  ;;  %v124_v42 = vadd.f32 %v123_v35, %v122_v29  ;;  %v98_v44 = vadd.f32 %v97_v36, %v96_v30 }
  0x1b   :  { %v104_v45 = vadd.f32 %v103_v37, %v102_v31  ;;  %v143_v47 = vadd.f32 %v142_v39, %v141_v33 }
  0x1c   :  { %v127_v48 = vsel %vm107_vm2, %v124_v42, %v118_v41 }
  0x1d   :  { %v108_v49 = vsel %vm107_vm2, %v104_v45, %v98_v44  ;;  %v129_v50 = vadd.f32 %v127_v48, %v112_v40  ;;  %v146_v52 = vsel %vm107_vm2, %v143_v47, %v137_v38 }
  0x1e   :  { %v110_v51 = vadd.f32 %v108_v49, %v92_v43  ;;  %v148_v53 = vadd.f32 %v146_v52, %v131_v46 }
  0x1f   :  { %130 = vst [vmem:[#allocation8] sm:$0x3] %v129_v50 }
  0x20   :  { %111 = vst [vmem:[#allocation7] sm:$0x3] %v110_v51  ;;  %171 = dma.vmem_to_hbm [thread:$0]  %s167_s1, 32, %s169_s29, [#allocation9]  }
  0x21   :  { %149 = vst [vmem:[#allocation10] sm:$0x3] %v148_v53  ;;  %160 = dma.vmem_to_hbm [thread:$0]  %s156_s5, 32, %s158_s8, [#allocation4]  }
  0x22   :  { %182 = dma.vmem_to_hbm [thread:$0]  %s178_s10, 32, %s180_s13, [#allocation9]  }
  0x23   :  { %335 = dma.done.wait [#allocation4], 32  }
  0x24   :  { %336 = vsyncadd [#allocation4], 4294967264 }
  0x25   :  { %337 = dma.done.wait [#allocation9], 64  }
  0x26   :  { %338 = vsyncadd [#allocation9], 4294967232 }
  0x27   :  { %195 = vsyncpa [#allocation3], 1 }
  0x28   :  { %196 = vsyncpa [#allocation6], 1 }
  0x29   :  { %197 = vsyncpa [#allocation4], 1 }
  0x2a   :  { %198 = vsyncpa [#allocation9], 1 }

</bundles_post_ra>
